<compile_context>
chip_gen: v7x
topology: tpu7x:2x2x1
jax: 0.10.0
libtpu: 0.0.40
codegen_flags: <defaults>
</compile_context>

<pallas_src>
import math
import functools

import jax
import jax.numpy as jnp
from jax import lax
from jax.experimental import pallas as pl
from jax.experimental.pallas import tpu as pltpu


_LANE = 128
_SUBLANE = 8

# PyTorch padding_mode -> jnp.pad mode
_PAD_MODE = {
    "zeros": "constant",
    "constant": "constant",
    "reflect": "reflect",
    "replicate": "edge",
    "circular": "wrap",
}


def _round_up(v, m):
    return ((v + m - 1) // m) * m


def _vmem_limit_and_budget():
    """Generation-aware VMEM limit/budget (v5e/v6e: 128 MiB physical, v7x: 64 MiB)."""
    cap = 64 << 20
    try:
        info = pltpu.get_tpu_info()
        cap = int(getattr(info, "vmem_capacity_bytes", cap) or cap)
    except Exception:
        pass
    limit = max(32 << 20, min((cap * 3) // 4, 64 << 20))
    budget = limit - (4 << 20)  # headroom for compiler scratch / semaphores
    return limit, budget


# ---------------------------------------------------------------------------
# stride == 1: direct kernel (no HBM im2col); taps are built in VMEM.
# ---------------------------------------------------------------------------
def _direct_conv_kernel(x_ref, w_ref, b_ref, o_ref, *, nb, K, chunk, cdtype):
    """One batch-chunk per grid step, full (padded) length resident in VMEM.

    x_ref : (nb, C_in, L_in_pad)
    w_ref : (K, C_out_p, C_in)     tap-major weights (resident, constant index_map)
    b_ref : (C_out_p, 1)           bias, sublane-oriented (free lane broadcast on VPU)
    o_ref : (nb, C_out_p, L_out_pad)  lane-dense (L_out_pad % 128 == 0)
    """
    L_out_pad = o_ref.shape[-1]
    C_out_p = o_ref.shape[1]
    w_taps = [w_ref[k] for k in range(K)]   # hoisted: loaded once per grid step
    bias = b_ref[...]

    def row(b, carry):
        for c0 in range(0, L_out_pad, chunk):          # static lane chunks
            csz = min(chunk, L_out_pad - c0)
            acc = jnp.zeros((C_out_p, csz), jnp.float32)
            for k in range(K):                          # static tap offsets
                xk = x_ref[b, :, pl.ds(c0 + k, csz)]    # (C_in, csz) shifted tap
                if cdtype is not None:
                    xk = xk.astype(cdtype)
                acc = acc + jnp.dot(w_taps[k], xk,
                                    preferred_element_type=jnp.float32)
            o_ref[b, :, pl.ds(c0, csz)] = (acc + bias).astype(o_ref.dtype)
        return carry

    if nb == 1:
        row(0, 0)
    else:
        lax.fori_loop(0, nb, row, 0)


def _direct_path(x, weight, bias_vec, padding, mode, compute_dtype, out_dtype,
                 vmem_limit, vmem_budget):
    N, C_in, L = x.shape
    C_out, _, K = weight.shape
    L_pad = L + 2 * padding
    L_out = L_pad - K + 1
    L_out_pad = _round_up(L_out, _LANE)
    L_in_pad = L_out_pad + K - 1
    C_out_p = _round_up(C_out, _SUBLANE)

    x_item = jnp.dtype(x.dtype).itemsize
    w_dtype = jnp.dtype(compute_dtype) if compute_dtype is not None else jnp.dtype(x.dtype)
    out_item = jnp.dtype(out_dtype).itemsize

    # VMEM accounting: double-buffered x / out tiles + resident weight & bias.
    resident = 2 * K * C_out_p * C_in * w_dtype.itemsize + 2 * C_out_p * 4
    per_row = 2 * C_in * L_in_pad * x_item + 2 * C_out_p * L_out_pad * out_item
    avail = vmem_budget - resident
    if per_row <= 0 or avail < per_row:
        return None                      # a single row doesn't fit: L-tiled im2col fallback

    nb_budget = avail // per_row
    nb_target = max(1, (2 << 20) // per_row)     # aim for a few MiB of tiles per step
    nb = int(min(nb_budget, nb_target, N))
    if N >= 2:
        nb = min(nb, N // 2)             # keep >= 2 grid steps (megacore / pipelining)
    nb = max(nb, 1)
    while N % nb != 0:                   # exact grid, no padded batch rows
        nb -= 1

    # One producer for the padded input (conv pad + lane-alignment pad fused for zeros).
    if mode == "constant":
        x_big = jnp.pad(x, ((0, 0), (0, 0), (padding, L_in_pad - L - padding)))
    else:
        x_big = jnp.pad(x, ((0, 0), (0, 0), (padding, padding)), mode=mode)
        extra = L_in_pad - L_pad
        if extra > 0:
            x_big = jnp.pad(x_big, ((0, 0), (0, 0), (0, extra)))

    w_dir = jnp.transpose(weight, (2, 0, 1))                      # (K, C_out, C_in)
    w_dir = jnp.pad(w_dir, ((0, 0), (0, C_out_p - C_out), (0, 0))).astype(w_dtype)
    b_col = jnp.pad(jnp.asarray(bias_vec, jnp.float32).reshape(C_out, 1),
                    ((0, C_out_p - C_out), (0, 0)))

    # Lane chunk for the in-kernel matmuls: keep the (C_out_p, chunk) f32 result
    # roughly within the vreg file and bound the statically-unrolled trace.
    chunk = max(_LANE, min(L_out_pad, ((16384 // max(C_out_p, 1)) // _LANE) * _LANE))
    if L_out_pad // chunk > 32:
        chunk = _round_up(-(-L_out_pad // 32), _LANE)
    chunk = min(chunk, L_out_pad)

    out = pl.pallas_call(
        functools.partial(_direct_conv_kernel, nb=nb, K=K, chunk=chunk,
                          cdtype=compute_dtype),
        out_shape=jax.ShapeDtypeStruct((N, C_out_p, L_out_pad), out_dtype),
        grid_spec=pltpu.PrefetchScalarGridSpec(
            num_scalar_prefetch=0,
            grid=(N // nb,),
            in_specs=[
                pl.BlockSpec((nb, C_in, L_in_pad), lambda i: (i, 0, 0)),
                # constant index_map => fetched once, stays resident across steps
                # TODO(synk): pipeline_mode=pl.Buffered(1) would halve the resident
                # weight footprint; left at the default for lowering robustness.
                pl.BlockSpec((K, C_out_p, C_in), lambda i: (0, 0, 0)),
                pl.BlockSpec((C_out_p, 1), lambda i: (0, 0)),
            ],
            out_specs=pl.BlockSpec((nb, C_out_p, L_out_pad), lambda i: (i, 0, 0)),
        ),
        compiler_params=pltpu.CompilerParams(
            dimension_semantics=("parallel",),
            vmem_limit_bytes=vmem_limit),
    )(x_big, w_dir, b_col)

    return out[:, :C_out, :L_out]


# ---------------------------------------------------------------------------
# stride > 1 (or oversized rows): fused-producer im2col + one fat MXU matmul.
# ---------------------------------------------------------------------------
def _im2col_mm_kernel(x_ref, w_ref, b_ref, o_ref):
    """x_ref: (1, Kc_pad, Lt); w_ref: (C_out_p, Kc_pad); b_ref: (C_out_p, 1);
    o_ref: (1, C_out_p, Lt) lane-dense."""
    acc = jnp.dot(w_ref[...], x_ref[0], preferred_element_type=jnp.float32)
    o_ref[0] = (acc + b_ref[...]).astype(o_ref.dtype)


def _im2col_path(x, weight, bias_vec, stride, padding, mode, compute_dtype, out_dtype,
                 vmem_limit, vmem_budget):
    N, C_in, L = x.shape
    C_out, _, K = weight.shape
    L_pad = L + 2 * padding
    L_out = (L_pad - K) // stride + 1
    L_out_pad = _round_up(L_out, _LANE)
    C_out_p = _round_up(C_out, _SUBLANE)

    cdtype = jnp.dtype(compute_dtype) if compute_dtype is not None else jnp.dtype(x.dtype)
    out_item = jnp.dtype(out_dtype).itemsize
    Kc = K * C_in
    # sublane packing of the contraction dim: 8 rows/vreg (32-bit), 16 (16-bit), 32 (8-bit)
    sub_align = {4: 8, 2: 16, 1: 32}.get(cdtype.itemsize, 8)
    Kc_pad = _round_up(Kc, sub_align)

    def tile_bytes(lt):
        return (2 * Kc_pad * lt * cdtype.itemsize           # double-buffered input tile
                + 2 * C_out_p * lt * out_item                # double-buffered output tile
                + 2 * C_out_p * Kc_pad * cdtype.itemsize     # weight buffers
                + 2 * C_out_p * 4)                           # bias buffers

    # lane-dense L tile (multiple of 128, up to 2048): fit VMEM, minimise padding
    # waste, prefer >= 2 total grid steps (megacore), avoid vreg-spilling epilogues.
    best = None
    for lt in range(2048, 0, -_LANE):
        if tile_bytes(lt) > vmem_budget:
            continue
        n_lt = -(-L_out_pad // lt)
        waste = n_lt * lt - L_out_pad
        key = (0 if N * n_lt >= 2 else 1, waste,
               1 if C_out_p * lt * 4 > (128 << 10) else 0, -lt)
        if best is None or key < best[0]:
            best = (key, lt, n_lt)
    if best is None:
        lt = _LANE
        n_lt = -(-L_out_pad // lt)
    else:
        _, lt, n_lt = best
    L_total = n_lt * lt

    # Fused im2col: ONE concatenate producing x_col directly in the compute dtype,
    # with the sublane-padding rows folded into the same producer (no separate
    # jnp.pad / astype passes over the big array).
    need = (L_total - 1) * stride + K
    if mode == "constant":
        x_big = jnp.pad(x, ((0, 0), (0, 0), (padding, need - L - padding)))
    else:
        x_big = jnp.pad(x, ((0, 0), (0, 0), (padding, padding)), mode=mode)
        extra = need - L_pad
        if extra > 0:
            x_big = jnp.pad(x_big, ((0, 0), (0, 0), (0, extra)))
    cols = [
        lax.slice(x_big, (0, 0, k),
                  (N, C_in, k + (L_total - 1) * stride + 1),
                  (1, 1, stride)).astype(cdtype)
        for k in range(K)
    ]
    if Kc_pad > Kc:
        cols.append(jnp.zeros((N, Kc_pad - Kc, L_total), cdtype))
    x_col = jnp.concatenate(cols, axis=1)                        # (N, Kc_pad, L_total)

    w2 = jnp.transpose(weight, (0, 2, 1)).reshape(C_out, Kc)     # tap-major rows
    w2 = jnp.pad(w2, ((0, C_out_p - C_out), (0, Kc_pad - Kc))).astype(cdtype)
    b_col = jnp.pad(jnp.asarray(bias_vec, jnp.float32).reshape(C_out, 1),
                    ((0, C_out_p - C_out), (0, 0)))

    out = pl.pallas_call(
        _im2col_mm_kernel,
        out_shape=jax.ShapeDtypeStruct((N, C_out_p, L_total), out_dtype),
        grid_spec=pltpu.PrefetchScalarGridSpec(
            num_scalar_prefetch=0,
            grid=(N, n_lt),
            in_specs=[
                pl.BlockSpec((1, Kc_pad, lt), lambda n, j: (n, 0, j)),
                pl.BlockSpec((C_out_p, Kc_pad), lambda n, j: (0, 0)),
                pl.BlockSpec((C_out_p, 1), lambda n, j: (0, 0)),
            ],
            out_specs=pl.BlockSpec((1, C_out_p, lt), lambda n, j: (n, 0, j)),
        ),
        compiler_params=pltpu.CompilerParams(
            dimension_semantics=("parallel", "parallel"),
            vmem_limit_bytes=vmem_limit),
    )(x_col, w2, b_col)

    return out[:, :C_out, :L_out]


# ---------------------------------------------------------------------------
# public wrapper
# ---------------------------------------------------------------------------
def new_skeleton_conv(x, weight, bias=None, *, stride=1, padding=0,
                      padding_mode="zeros", compute_dtype=None, use_direct=True):
    """Forward pass equivalent to NewSkeletonConv.forward (NCL layout).

    compute_dtype: optional matmul operand dtype (e.g. jnp.bfloat16 — recommended
    on v5e/v6e/v7x); accumulation is always f32 and the output dtype follows x.
    """
    N, C_in, L = x.shape
    C_out, C_in_w, K = weight.shape
    assert C_in == C_in_w, "in_channels mismatch"
    mode = _PAD_MODE.get(padding_mode, padding_mode)
    L_out = (L + 2 * padding - K) // stride + 1
    if L_out <= 0:
        raise ValueError("NewSkeletonConv: non-positive output length")
    out_dtype = x.dtype
    if bias is None:
        bias = jnp.zeros((C_out,), jnp.float32)
    vmem_limit, vmem_budget = _vmem_limit_and_budget()

    if use_direct and stride == 1:
        res = _direct_path(x, weight, bias, padding, mode, compute_dtype, out_dtype,
                           vmem_limit, vmem_budget)
        if res is not None:
            return res
    return _im2col_path(x, weight, bias, stride, padding, mode, compute_dtype,
                        out_dtype, vmem_limit, vmem_budget)


def init_params(key, in_channels, out_channels, kernel_size, use_bias=True):
    """Deterministic init matching reset_parameters():
       kaiming_uniform_(a=sqrt(5)) => U(-1/sqrt(fan_in), 1/sqrt(fan_in)) for weight,
       U(-1/sqrt(fan_in), 1/sqrt(fan_in)) for bias."""
    kw, kb = jax.random.split(key)
    fan_in = in_channels * kernel_size
    bound = 1.0 / math.sqrt(fan_in)
    weight = jax.random.uniform(
        kw, (out_channels, in_channels, kernel_size), jnp.float32, -bound, bound
    )
    bias = (
        jax.random.uniform(kb, (out_channels,), jnp.float32, -bound, bound)
        if use_bias
        else None
    )
    return weight, bias


def _ref_conv(x, weight, bias, stride, padding, padding_mode):
    mode = _PAD_MODE[padding_mode]
    xp = jnp.pad(x, ((0, 0), (0, 0), (padding, padding)), mode=mode) if padding > 0 else x
    r = lax.conv_general_dilated(
        xp, weight, window_strides=(stride,), padding="VALID",
        dimension_numbers=("NCH", "OIH", "NCH"),
    )
    if bias is not None:
        r = r + bias[None, :, None]
    return r


if __name__ == "__main__":
    key = jax.random.PRNGKey(0)
    k_x, k_p, k_x2, k_p2 = jax.random.split(key, 4)

    # small shapes consistent with the module's forward (1-D conv, NCL input)
    N, C_in, L = 2, 4, 16
    C_out, K = 8, 3
    x = jax.random.normal(k_x, (N, C_in, L), jnp.float32)
    weight, bias = init_params(k_p, C_in, C_out, K, use_bias=True)

    # stride=1 / zeros padding -> direct (no-HBM-im2col) path
    out = jax.block_until_ready(
        new_skeleton_conv(x, weight, bias, stride=1, padding=1, padding_mode="zeros"))
    ref = _ref_conv(x, weight, bias, 1, 1, "zeros")
    assert out.shape == ref.shape
    assert jnp.max(jnp.abs(out - ref)) < 1e-4, "mismatch vs reference conv1d (zeros, s=1)"

    # stride=2 / reflect padding -> fused-producer im2col path
    out2 = jax.block_until_ready(
        new_skeleton_conv(x, weight, bias, stride=2, padding=1, padding_mode="reflect"))
    ref2 = _ref_conv(x, weight, bias, 2, 1, "reflect")
    assert out2.shape == ref2.shape
    assert jnp.max(jnp.abs(out2 - ref2)) < 1e-4, "mismatch vs reference conv1d (reflect, s=2)"

    # bf16 operand path (f32 accumulation) on the direct kernel — looser tolerance
    out3 = jax.block_until_ready(
        new_skeleton_conv(x, weight, bias, stride=1, padding=1,
                          padding_mode="zeros", compute_dtype=jnp.bfloat16))
    assert jnp.max(jnp.abs(out3 - ref)) < 5e-2, "mismatch vs reference conv1d (bf16 operands)"

    # slightly larger case: exercises nb>1 batch chunking, C_out padding (20->24)
    # and the multi-chunk epilogue of the direct kernel
    N2, C2_in, L2, C2_out = 4, 12, 700, 20
    x2 = jax.random.normal(k_x2, (N2, C2_in, L2), jnp.float32)
    w2p, b2p = init_params(k_p2, C2_in, C2_out, K, use_bias=True)
    out4 = jax.block_until_ready(
        new_skeleton_conv(x2, w2p, b2p, stride=1, padding=1, padding_mode="zeros"))
    ref4 = _ref_conv(x2, w2p, b2p, 1, 1, "zeros")
    assert out4.shape == ref4.shape
    assert jnp.max(jnp.abs(out4 - ref4)) < 5e-4, "mismatch vs reference conv1d (larger, nb>1)"

    print("KERNEL_OK")
</pallas_src>

<mosaic_0001>
module attributes {stable_mosaic.version = 11 : i64} {
  func.func @_direct_conv_kernel(%arg0: i32, %arg1: memref<1x4x130xf32, #tpu.memory_space<vmem>>, %arg2: memref<3x8x4xf32, #tpu.memory_space<vmem>>, %arg3: memref<8x1xf32, #tpu.memory_space<vmem>>, %arg4: memref<1x8x128xf32, #tpu.memory_space<vmem>>) attributes {dimension_semantics = [#tpu.dimension_semantics<parallel>], iteration_bounds = array<i64: 2>, scalar_prefetch = 0 : i64, scratch_operands = 0 : i64, tpu.core_type = #tpu.core_type<tc>, window_params = [{transform_indices = @transform_0, window_bounds = array<i64: 1, 4, 130>}, {pipeline_mode = #tpu.pipeline_mode<synchronous>, transform_indices = @transform_1, window_bounds = array<i64: 3, 8, 4>}, {pipeline_mode = #tpu.pipeline_mode<synchronous>, transform_indices = @transform_2, window_bounds = array<i64: 8, 1>}, {transform_indices = @transform_3, window_bounds = array<i64: 1, 8, 128>}]} {
    %c0 = arith.constant 0 : index
    %c0_0 = arith.constant 0 : index
    %c0_1 = arith.constant 0 : index
    %0 = vector.load %arg2[%c0, %c0_0, %c0_1] : memref<3x8x4xf32, #tpu.memory_space<vmem>>, vector<1x8x4xf32>
    %1 = vector.shape_cast %0 : vector<1x8x4xf32> to vector<8x4xf32>
    %c1 = arith.constant 1 : index
    %c0_2 = arith.constant 0 : index
    %c0_3 = arith.constant 0 : index
    %2 = vector.load %arg2[%c1, %c0_2, %c0_3] : memref<3x8x4xf32, #tpu.memory_space<vmem>>, vector<1x8x4xf32>
    %3 = vector.shape_cast %2 : vector<1x8x4xf32> to vector<8x4xf32>
    %c2 = arith.constant 2 : index
    %c0_4 = arith.constant 0 : index
    %c0_5 = arith.constant 0 : index
    %4 = vector.load %arg2[%c2, %c0_4, %c0_5] : memref<3x8x4xf32, #tpu.memory_space<vmem>>, vector<1x8x4xf32>
    %5 = vector.shape_cast %4 : vector<1x8x4xf32> to vector<8x4xf32>
    %c0_6 = arith.constant 0 : index
    %c0_7 = arith.constant 0 : index
    %6 = vector.load %arg3[%c0_6, %c0_7] : memref<8x1xf32, #tpu.memory_space<vmem>>, vector<8x1xf32>
    %cst = arith.constant 0.000000e+00 : f32
    %7 = vector.broadcast %cst : f32 to vector<8x128xf32>
    %c0_8 = arith.constant 0 : index
    %c0_9 = arith.constant 0 : index
    %c0_10 = arith.constant 0 : index
    %8 = vector.load %arg1[%c0_8, %c0_9, %c0_10] : memref<1x4x130xf32, #tpu.memory_space<vmem>>, vector<1x4x128xf32>
    %9 = vector.shape_cast %8 : vector<1x4x128xf32> to vector<4x128xf32>
    %cst_11 = arith.constant dense<0.000000e+00> : vector<8x128xf32>
    %10 = tpu.matmul %1, %9, %cst_11 {dimension_numbers = #tpu.dot_dimension_numbers<[1], [0], [0], [1], [0, 0, 1, 1], [], []>} : vector<8x4xf32>, vector<4x128xf32>, vector<8x128xf32> -> vector<8x128xf32>
    %11 = arith.addf %7, %10 : vector<8x128xf32>
    %c0_12 = arith.constant 0 : index
    %c0_13 = arith.constant 0 : index
    %c1_14 = arith.constant 1 : index
    %12 = vector.load %arg1[%c0_12, %c0_13, %c1_14] : memref<1x4x130xf32, #tpu.memory_space<vmem>>, vector<1x4x128xf32>
    %13 = vector.shape_cast %12 : vector<1x4x128xf32> to vector<4x128xf32>
    %cst_15 = arith.constant dense<0.000000e+00> : vector<8x128xf32>
    %14 = tpu.matmul %3, %13, %cst_15 {dimension_numbers = #tpu.dot_dimension_numbers<[1], [0], [0], [1], [0, 0, 1, 1], [], []>} : vector<8x4xf32>, vector<4x128xf32>, vector<8x128xf32> -> vector<8x128xf32>
    %15 = arith.addf %11, %14 : vector<8x128xf32>
    %c0_16 = arith.constant 0 : index
    %c0_17 = arith.constant 0 : index
    %c2_18 = arith.constant 2 : index
    %16 = vector.load %arg1[%c0_16, %c0_17, %c2_18] : memref<1x4x130xf32, #tpu.memory_space<vmem>>, vector<1x4x128xf32>
    %17 = vector.shape_cast %16 : vector<1x4x128xf32> to vector<4x128xf32>
    %cst_19 = arith.constant dense<0.000000e+00> : vector<8x128xf32>
    %18 = tpu.matmul %5, %17, %cst_19 {dimension_numbers = #tpu.dot_dimension_numbers<[1], [0], [0], [1], [0, 0, 1, 1], [], []>} : vector<8x4xf32>, vector<4x128xf32>, vector<8x128xf32> -> vector<8x128xf32>
    %19 = arith.addf %15, %18 : vector<8x128xf32>
    %20 = vector.broadcast %6 : vector<8x1xf32> to vector<8x128xf32>
    %21 = arith.addf %19, %20 : vector<8x128xf32>
    %c0_20 = arith.constant 0 : index
    %c0_21 = arith.constant 0 : index
    %c0_22 = arith.constant 0 : index
    %22 = vector.load %arg4[%c0_20, %c0_21, %c0_22] : memref<1x8x128xf32, #tpu.memory_space<vmem>>, vector<1x8x128xf32>
    %23 = vector.shape_cast %22 : vector<1x8x128xf32> to vector<8x128xf32>
    %24 = vector.shape_cast %21 : vector<8x128xf32> to vector<1x8x128xf32>
    tpu.vector_store %arg4[%c0_20, %c0_21, %c0_22], %24 {strides = array<i32>} : memref<1x8x128xf32, #tpu.memory_space<vmem>>, vector<1x8x128xf32>,
    return
  }
  func.func @transform_0(%arg0: i32) -> (i32, i32, i32) {
    %c0_i32 = arith.constant 0 : i32
    %c0_i32_0 = arith.constant 0 : i32
    %c0_i32_1 = arith.constant 0 : i32
    return %arg0, %c0_i32, %c0_i32_0 : i32, i32, i32
  }
  func.func @transform_1(%arg0: i32) -> (i32, i32, i32) {
    %c0_i32 = arith.constant 0 : i32
    %c0_i32_0 = arith.constant 0 : i32
    %c0_i32_1 = arith.constant 0 : i32
    %c0_i32_2 = arith.constant 0 : i32
    return %c0_i32, %c0_i32_0, %c0_i32_1 : i32, i32, i32
  }
  func.func @transform_2(%arg0: i32) -> (i32, i32) {
    %c0_i32 = arith.constant 0 : i32
    %c0_i32_0 = arith.constant 0 : i32
    %c0_i32_1 = arith.constant 0 : i32
    return %c0_i32, %c0_i32_0 : i32, i32
  }
  func.func @transform_3(%arg0: i32) -> (i32, i32, i32) {
    %c0_i32 = arith.constant 0 : i32
    %c0_i32_0 = arith.constant 0 : i32
    %c0_i32_1 = arith.constant 0 : i32
    return %arg0, %c0_i32, %c0_i32_0 : i32, i32, i32
  }
}

</mosaic_0001>

<bundles_post_ra>
// kernel: tpu_custom_call.1
= control target key start
LH: loop header
LB: loop body
LE: loop exit
PB: predicated region body
PF: predicated region fallthrough
CT: control target
= control target key end

     0   :  { %8 = vsyncpa [#allocation3], 0  ;;  %s801_s0 = inlined_call_operand.vmem [shape: f32[2,4,130], index: 0, kind: input, shape index: {}]   ;;  %s802_s1 = inlined_call_operand.vmem [shape: f32[3,8,4], index: 1, kind: input, shape index: {}]   ;;  %s803_s2 = inlined_call_operand.vmem [shape: f32[8,1], index: 2, kind: input, shape index: {}]   ;;  %s804_s3 = inlined_call_operand.hbm [shape: f32[2,8,128], index: 3, kind: output, shape index: {}]  }
   0x1   :  { %10 = vsyncpa [#allocation3 + $0x1], 0  ;;  %s680_s12 = smov 0   ;;  %s682_s13 = smov 0  }
   0x2   :  { %s684_s14 = smov 0   ;;  %s686_s15 = smov 0  }
   0x3 LB: > { %s701_s16 = sadd.s32 4294967295, %s652_s15   ;;  %s503_s17 = sadd.s32 4294967294, %s652_s15   ;;  %s652_s15 = sphi %s686_s15, %s810_s15   ;;  %s648_s14 = sphi %s684_s14, %s809_s14   ;;  %s644_s13 = sphi %s682_s13, %s808_s13   ;;  %s640_s12 = sphi %s680_s12, %s807_s12  }
   0x4   : > { %s705_s18 = sadd.s32 1, %s652_s15   ;;  %s91_s19 = sadd.s32 1, %s648_s14 }
   0x5   : > { %s88_s20 = ssub.s32 %s652_s15, %s705_s18  ;;  %p101_p0 = scmp.ne.s32.totalorder %s648_s14, %s644_s13 }
   0x6   : > { %p89_p1 = scmp.eq.s32.totalorder %s88_s20, 0  ;;  %p102_p2 = scmp.eq.s32.totalorder %s701_s16, 1 }
   0x7   : > { %p107_p3 = scmp.ne.s32.totalorder %s644_s13, %s640_s12  ;;  %p108_p4 = scmp.eq.s32.totalorder %s503_s17, 1 }
   0x8   : > { %s716_s21 = scalar_select %p89_p1, %s648_s14, %s91_s19  }
   0x9   : > { %p718_p5 = por %p102_p2, %p101_p0  ;;  %p722_p6 = por %p108_p4, %p107_p3 }
   0xa   : > { %p506_p7 = scmp.ge.s32.totalorder %s652_s15, 1  ;;  %p140_p8 = scmp.lt.s32.totalorder %s652_s15, 3 }
   0xc   : > { %p141_p9 = pnand %p506_p7, %p140_p8 }
   0xd   : > { %p164_p10 = scmp.lt.s32.totalorder (!%p141_p9), %s701_s16, 1  ;;  %v654_v0 = vmov (!%p141_p9), 0.0   ;;  %vm655_vm0 = vmmov (!%p141_p9), 0   ;;  %vm189_vm1 = vcmask (!%p141_p9), 1043456   ;;  %v656_v1 = vmov (!%p141_p9), 0   ;;  %v169_v4 = vld [vmem:[%s802_s1] sm:$0xff] (!%p141_p9) }
   0xe   : > { %144 = sbr.rel (%p141_p9) target bundleno = 381 (0x17d), region = 32  ;;  %529 = vmatprep.subr.mxu0 (!%p141_p9), %v654_v0  ;;  %534 = vmatprep.subr.mxu1 (!%p141_p9), %v654_v0  ;;  %vm185_vm2 = vcmask (!%p141_p9), 31744   ;;  %s657_s4 = smov (!%p141_p9), 126   ;;  %v174_v6 = vld [vmem:[%s803_s2] sm:$0xff] (!%p141_p9)  ;;  %vm183_vm3 = vcmask (!%p141_p9), 1039360   ;;  %vm345_vm4 = vcmask (!%p141_p9), 1031168  }
   0xf   : > { %531 = vmatprep.mubr.msk.f32.mxu0 (!%p141_p9), %vm655_vm0, %v654_v0  ;;  %536 = vmatprep.mubr.msk.f32.mxu1 (!%p141_p9), %vm655_vm0, %v654_v0  ;;  %s658_s5 = smov (!%p141_p9), 127   ;;  %v510_v11 = vld [vmem:[%s802_s1 + $0x8] sm:$0xff] (!%p141_p9)  ;;  %v511_v14 = vld [vmem:[%s802_s1 + $0x10] sm:$0xff] (!%p141_p9)  ;;  %s161_s17 = sand.u32 (!%p141_p9), 1, %s644_s13  }
  0x10   : > { %588 = vset.pattern.permute.xlu0 (!%p141_p9), %v656_v1  ;;  %s507_s19 = sshll.u32 (!%p141_p9), %s161_s17, 3  ;;  %s519_s20 = sshll.u32 (!%p141_p9), %s701_s16, 7 }
  0x11   : > { %s431_s29 = scalar_lea.sflag (!%p141_p9), [#allocation3], %s161_s17 }
  0x15   : > { %s165_s24 = scalar_select %p164_p10, %s701_s16, 1 }
  0x16   : > { %s659_s16 = smov [#allocation2]  }
  0x17   : > { %s522_s25 = sshll.u32 %s165_s24, 3  ;;  %s163_s24 = scalar_lea.vmem [#allocation2], %s507_s19 }
  0x18   : > { %s168_s28 = scalar_lea.vmem %s801_s0, %s522_s25  ;;  %s444_s25 = sshll.u32 %s163_s24, 4  ;;  %s761_s25 = int_to_ptr.vmem [resolvable:$true] %s444_s25 }
  0x19   : > { %v338_v2 = vld [vmem:[%s168_s28] sm:$0xff]  ;;  %s590_s30 = scalar_lea.vmem %s761_s25, 128 }
  0x1a   : > { %v175_v3 = vld [vmem:[%s168_s28] sm:$0xf]  ;;  %341 = vrot.lane.b32.xlu1 %v338_v2, %s657_s4  ;;  %v340_v5 = vcombine.high %v338_v2, %v338_v2  ;;  %179 = vrot.lane.b32.xlu0 %v338_v2, %s658_s5  ;;  %s759_s28 = scalar_lea.hbm %s804_s3, %s519_s20  ;;  %p591_p11 = scmp.ne.s32.totalorder %s761_s25, %s590_s30 }
  0x1b   : > { %535 = vmatpush3.msk.msra.mxu1 %vm189_vm1, %v175_v3 }
  0x1c   : > { %537 = vmatmul.mubr.msk.f32.vlgmr.msra.gmra.mrb[0].mxu1 %vm185_vm2, %v169_v4  ;;  %p592_p12 = pnand %p591_p11, %p718_p5 }
  0x1e   : > { %343 = vrot.lane.b32.xlu1 %v340_v5, %s657_s4  ;;  %181 = vrot.lane.b32.xlu0 %v340_v5, %s658_s5  ;;  %p593_p13 = pneg %p592_p12  ;;  %s594_s4 = sshll.u32 %s659_s16, 4  ;;  %s595_s4 = int_to_ptr.vmem [resolvable:$false] %s594_s4 }
  0x1f   : > { %s596_s5 = scalar_lea.vmem %s595_s4, 256  ;;  %p597_p0 = scmp.lt.s32.totalorder %s761_s25, %s595_s4 }
  0x20   : > { %p598_p1 = scmp.lt.s32.totalorder %s596_s5, %s590_s30 }
  0x22   : > { %425 = vperm.xlu0 %588, %v174_v6   ;;  %p599_p2 = por %p598_p1, %p597_p0 }
  0x24   : > { %p600_p3 = pnand %p599_p2, %p593_p13 }
  0x8c   : > { %v342_v7 = vpop.permute.xlu1 %341  ;;  %v180_v8 = vpop.permute.xlu0 %179 }
  0x90   : > { %v344_v9 = vpop.permute.xlu1 %343  ;;  %v182_v10 = vpop.permute.xlu0 %181 }
  0x91   : > { %v184_v12 = vsel %vm183_vm3, %v180_v8, %v182_v10  ;;  %v346_v13 = vsel %vm345_vm4, %v342_v7, %v344_v9 }
  0x92   : > { %530 = vmatpush3.msk.msra.mxu0 %vm189_vm1, %v184_v12 }
  0x93   : > { %532 = vmatmul.mubr.msk.f32.vlgmr.msra.gmra.mrb[0].mxu0 %vm185_vm2, %v510_v11  ;;  %539 = vmatprep.subr.mxu0 %v654_v0 }
  0x94   : > { %540 = vmatpush3.msk.msra.mxu0 %vm189_vm1, %v346_v13  ;;  %541 = vmatprep.mubr.msk.f32.mxu0 %vm655_vm0, %v654_v0 }
  0x97   : > { %542 = vmatmul.mubr.msk.f32.vlgmr.msra.gmra.mrb[2].mxu0 %vm185_vm2, %v511_v14 }
  0xa1   : > { %v426_v21 = vpop.permute.xlu0 %425 }
  0xef   : > { %v334_v15 = vpop.f32.mrb[0].mxu1 }
  0xf0   : > { %v538_v16 = vpop.f32.mrb[1].mxu1 }
 0x166   : > { %v258_v17 = vpop.f32.mrb[0].mxu0 }
 0x167   : > { %v533_v18 = vpop.f32.mrb[1].mxu0  ;;  %v335_v19 = vadd.f32 %v334_v15, %v258_v17 }
 0x16a   : > { %v418_v20 = vpop.f32.mrb[2].mxu0 }
 0x16b   : > { %v422_v22 = vadd.f32 %v418_v20, %v335_v19  ;;  %v543_v23 = vpop.f32.mrb[3].mxu0 }
 0x16d   : > { %v428_v24 = vadd.f32 %v426_v21, %v422_v22 }
 0x16f   : > { %429 = vst [vmem:[%s163_s24] sm:$0xff] %v428_v24 }
 0x170   : > { %603 = shalt.err (!%p600_p3)
}
 0x171   : > { %s604_s6 = scalar_lea.hbm %s759_s28, 128  ;;  %s608_s9 = scalar_lea.hbm %s804_s3, 256 }
 0x172   : > { %p605_p4 = scmp.ne.s32.totalorder %s759_s28, %s604_s6  ;;  %p609_p9 = scmp.lt.u32.totalorder %s759_s28, %s804_s3 }
 0x173   : > { %p610_p10 = scmp.lt.u32.totalorder %s608_s9, %s604_s6  ;;  %p612_p12 = scmp.lt.u32.totalorder %s604_s6, %s759_s28 }
 0x174   : > { %p606_p7 = pnand %p605_p4, %p718_p5 }
 0x175   : > { %p611_p11 = por %p610_p10, %p609_p9 }
 0x176   : > { %p607_p8 = pneg %p606_p7 }
 0x177   : > { %p613_p13 = por %p612_p12, %p611_p11 }
 0x179   : > { %p614_p0 = pnand %p613_p13, %p607_p8 }
 0x17b   : > { %617 = shalt.err (!%p614_p0)
}
 0x17c   : > { %544 = dma.vmem_to_hbm [thread:$0]  (%p718_p5), %s761_s25, 128, %s759_s28, %s431_s29  }
 0x17d PF: > { %p550_p1 = scmp.ge.s32.totalorder %s652_s15, 2  ;;  %s456_s17 = sand.u32 1, %s640_s12  }
 0x17e   : > { %s457_s19 = scalar_lea.sflag [#allocation3], %s456_s17 }
 0x17f   : > { %p547_p2 = pnand %p550_p1, %p722_p6 }
 0x181   : > { %635 = dma.done.wait (!%p547_p2), %s457_s19, 128  }
 0x182   : > { %637 = vsyncadd (!%p547_p2), %s457_s19, 4294967168  ;;  %p13_p3 = scmp.ge.s32.totalorder %s705_s18, 4   ;;  %s807_s12 = smov %s644_s13 }
 0x183   : > { %s808_s13 = smov %s648_s14  ;;  %s809_s14 = smov %s716_s21 }
 0x184   : > { %s810_s15 = smov %s705_s18  ;;  %15 = sbr.rel (!%p13_p3) target bundleno = 3 (0x3), region = 69 }
 0x18b   :  { %462 = vsyncpa [#allocation3], 1 }
 0x18c   :  { %464 = vsyncpa [#allocation3 + $0x1], 1 }

</bundles_post_ra>
